<compile_context>
chip_gen: v7x
topology: tpu7x:2x2x1
jax: 0.10.0
libtpu: 0.0.40
codegen_flags: <defaults>
</compile_context>

<pallas_src>
import jax
import jax.numpy as jnp
from jax.experimental import pallas as pl
from jax.experimental.pallas import tpu as pltpu


_LANES = 128
_MAX_ROWS_PER_TILE = 4096        # 4096 rows x 128 lanes x 4 B = 2 MiB per f32 block
_SINGLE_BLOCK_BYTES = 256 << 10  # problems <= 256 KiB run as a single grid step
_VMEM_LIMIT_BYTES = 32 << 20     # 3 arrays x 2 buffers x 2 MiB = 12 MiB + headroom;
                                 # within v5e/v6e (128 MiB phys) and v7x (64 MiB/TC)


def _add_offset_kernel(scale_ref, x_ref, bias_ref, o_ref):
    # scale_ref: (1,) f32 in SMEM.
    # x_ref/o_ref: VMEM tile; bias_ref: matching tile (broadcast over the
    # leading/batch dim by jnp broadcasting when shapes differ there).
    scale = scale_ref[0]
    x = x_ref[...].astype(jnp.float32)
    b = bias_ref[...].astype(jnp.float32)
    o_ref[...] = (x + scale * b).astype(o_ref.dtype)


def add_offset(x, bias, scale):
    """y = x + scale * bias  (bias broadcast over the batch dimension)."""
    N, C, H, W = x.shape
    assert bias.shape == (1, C, H, W), "bias must be (1, C, H, W)"
    M = C * H * W

    # Keep the scale in f32 (SMEM is a 32-bit scalar space).
    scale_arr = jnp.asarray(scale, dtype=jnp.float32).reshape((1,))
    smem_spec = pl.BlockSpec(memory_space=pltpu.SMEM)

    if M % _LANES != 0:
        # Ragged feature size: do NOT jnp.pad in the wrapper (that would add a
        # full extra HBM read+write of x plus an output-slice copy).  Use one
        # full-feature block per batch element; only the final partial vreg of
        # each row uses masked stores.
        # TODO(synk): a multi-MiB misaligned C*H*W per batch element would need
        # in-kernel row tiling + lane masking instead of a full-feature block.
        x3 = x.reshape(N, 1, M)
        b3 = bias.reshape(1, 1, M)
        out3 = pl.pallas_call(
            _add_offset_kernel,
            out_shape=jax.ShapeDtypeStruct((N, 1, M), x.dtype),
            grid=(N,),
            in_specs=[
                smem_spec,
                pl.BlockSpec((1, 1, M), lambda n: (n, 0, 0)),
                pl.BlockSpec((1, 1, M), lambda n: (0, 0, 0)),  # bias resident
            ],
            out_specs=pl.BlockSpec((1, 1, M), lambda n: (n, 0, 0)),
            compiler_params=pltpu.CompilerParams(
                dimension_semantics=("arbitrary",),
                vmem_limit_bytes=_VMEM_LIMIT_BYTES,
            ),
        )(scale_arr, x3, b3)
        return out3.reshape(N, C, H, W)

    # Lane-dense view: (N, C, H, W) -> (N, R, 128), last dim fills all lanes
    # so stores are unmasked vst.
    R = M // _LANES
    x3 = x.reshape(N, R, _LANES)
    b3 = bias.reshape(1, R, _LANES)

    total_bytes = N * M * x.dtype.itemsize
    if total_bytes <= _SINGLE_BLOCK_BYTES:
        # Tiny problem (the demo lands here): one grid step over everything,
        # avoiding per-grid-step overhead.
        grid = (1,)
        x_spec = pl.BlockSpec((N, R, _LANES), lambda i: (0, 0, 0))
        b_spec = pl.BlockSpec((1, R, _LANES), lambda i: (0, 0, 0))
        o_spec = pl.BlockSpec((N, R, _LANES), lambda i: (0, 0, 0))
        dim_sem = ("arbitrary",)
    else:
        # TR == R (full extent) when R is small, otherwise a multiple of 8, so
        # the (8, 128) block-shape rule holds; boundary blocks handled by Pallas.
        TR = min(R, _MAX_ROWS_PER_TILE)
        # Grid order (row_tiles, batch): batch index n is the innermost axis, so
        # the bias block index (0, j, 0) does not change across consecutive
        # steps and the pipeline keeps the bias tile resident (no re-DMA per n).
        # Leading "parallel" row-tile axis lets v7x's two TensorCores each take
        # half the j range while preserving per-core bias residency.
        grid = (pl.cdiv(R, TR), N)
        x_spec = pl.BlockSpec((1, TR, _LANES), lambda j, n: (n, j, 0))
        b_spec = pl.BlockSpec((1, TR, _LANES), lambda j, n: (0, j, 0))
        o_spec = pl.BlockSpec((1, TR, _LANES), lambda j, n: (n, j, 0))
        dim_sem = ("parallel", "arbitrary")

    out3 = pl.pallas_call(
        _add_offset_kernel,
        out_shape=jax.ShapeDtypeStruct((N, R, _LANES), x.dtype),
        grid=grid,
        in_specs=[smem_spec, x_spec, b_spec],
        out_specs=o_spec,
        compiler_params=pltpu.CompilerParams(
            dimension_semantics=dim_sem,
            vmem_limit_bytes=_VMEM_LIMIT_BYTES,
        ),
    )(scale_arr, x3, b3)
    return out3.reshape(N, C, H, W)


class AddOffsetPallas:
    """Mirror of the PyTorch AddOffset module (deterministic init)."""

    def __init__(self, conv_channels, height, width, scale=10.0):
        self.scale = jnp.float32(scale)
        # nn.Parameter(torch.zeros(1, C, H, W))
        self.bias = jnp.zeros((1, conv_channels, height, width), dtype=jnp.float32)

    def __call__(self, x):
        return add_offset(x, self.bias, self.scale)


if __name__ == "__main__":
    key = jax.random.PRNGKey(0)
    N, C, H, W = 2, 4, 16, 16

    kx, kb = jax.random.split(key)
    x = jax.random.normal(kx, (N, C, H, W), dtype=jnp.float32)

    module = AddOffsetPallas(conv_channels=C, height=H, width=W, scale=10.0)
    # Use a nonzero bias so the broadcast path is actually exercised
    # (the PyTorch module initializes bias to zeros; same op either way).
    module.bias = jax.random.normal(kb, (1, C, H, W), dtype=jnp.float32)

    y = jax.block_until_ready(module(x))

    # Reference check in plain JAX.
    y_ref = x + module.scale * module.bias
    assert y.shape == y_ref.shape, "shape mismatch vs reference"
    assert jnp.allclose(y, y_ref, atol=1e-6, rtol=1e-6), "mismatch vs reference"

    print("KERNEL_OK")
</pallas_src>

<mosaic_0001>
module attributes {stable_mosaic.version = 11 : i64} {
  func.func @_add_offset_kernel(%arg0: i32, %arg1: memref<1xf32, #tpu.memory_space<smem>>, %arg2: memref<2x8x128xf32, #tpu.memory_space<vmem>>, %arg3: memref<1x8x128xf32, #tpu.memory_space<vmem>>, %arg4: memref<2x8x128xf32, #tpu.memory_space<vmem>>) attributes {dimension_semantics = [#tpu.dimension_semantics<arbitrary>], iteration_bounds = array<i64: 1>, scalar_prefetch = 0 : i64, scratch_operands = 0 : i64, tpu.core_type = #tpu.core_type<tc>, window_params = [{transform_indices = @transform_0, window_bounds = array<i64: 1>}, {pipeline_mode = #tpu.pipeline_mode<synchronous>, transform_indices = @transform_1, window_bounds = array<i64: 2, 8, 128>}, {pipeline_mode = #tpu.pipeline_mode<synchronous>, transform_indices = @transform_2, window_bounds = array<i64: 1, 8, 128>}, {pipeline_mode = #tpu.pipeline_mode<synchronous>, transform_indices = @transform_3, window_bounds = array<i64: 2, 8, 128>}]} {
    %c0 = arith.constant 0 : index
    %0 = memref.load %arg1[%c0] : memref<1xf32, #tpu.memory_space<smem>>
    %c0_0 = arith.constant 0 : index
    %c0_1 = arith.constant 0 : index
    %c0_2 = arith.constant 0 : index
    %1 = vector.load %arg2[%c0_0, %c0_1, %c0_2] : memref<2x8x128xf32, #tpu.memory_space<vmem>>, vector<2x8x128xf32>
    %c0_3 = arith.constant 0 : index
    %c0_4 = arith.constant 0 : index
    %c0_5 = arith.constant 0 : index
    %2 = vector.load %arg3[%c0_3, %c0_4, %c0_5] : memref<1x8x128xf32, #tpu.memory_space<vmem>>, vector<1x8x128xf32>
    %3 = vector.broadcast %0 : f32 to vector<1x8x128xf32>
    %4 = arith.mulf %3, %2 : vector<1x8x128xf32>
    %5 = vector.broadcast %4 : vector<1x8x128xf32> to vector<2x8x128xf32>
    %6 = arith.addf %1, %5 : vector<2x8x128xf32>
    %c0_6 = arith.constant 0 : index
    %c0_7 = arith.constant 0 : index
    %c0_8 = arith.constant 0 : index
    %7 = vector.load %arg4[%c0_6, %c0_7, %c0_8] : memref<2x8x128xf32, #tpu.memory_space<vmem>>, vector<2x8x128xf32>
    tpu.vector_store %arg4[%c0_6, %c0_7, %c0_8], %6 {strides = array<i32>} : memref<2x8x128xf32, #tpu.memory_space<vmem>>, vector<2x8x128xf32>,
    return
  }
  func.func @transform_0(%arg0: i32) -> i32 {
    %c0_i32 = arith.constant 0 : i32
    %c0_i32_0 = arith.constant 0 : i32
    return %c0_i32 : i32
  }
  func.func @transform_1(%arg0: i32) -> (i32, i32, i32) {
    %c0_i32 = arith.constant 0 : i32
    %c0_i32_0 = arith.constant 0 : i32
    %c0_i32_1 = arith.constant 0 : i32
    %c0_i32_2 = arith.constant 0 : i32
    return %c0_i32, %c0_i32_0, %c0_i32_1 : i32, i32, i32
  }
  func.func @transform_2(%arg0: i32) -> (i32, i32, i32) {
    %c0_i32 = arith.constant 0 : i32
    %c0_i32_0 = arith.constant 0 : i32
    %c0_i32_1 = arith.constant 0 : i32
    %c0_i32_2 = arith.constant 0 : i32
    return %c0_i32, %c0_i32_0, %c0_i32_1 : i32, i32, i32
  }
  func.func @transform_3(%arg0: i32) -> (i32, i32, i32) {
    %c0_i32 = arith.constant 0 : i32
    %c0_i32_0 = arith.constant 0 : i32
    %c0_i32_1 = arith.constant 0 : i32
    %c0_i32_2 = arith.constant 0 : i32
    return %c0_i32, %c0_i32_0, %c0_i32_1 : i32, i32, i32
  }
}

</mosaic_0001>

<bundles_post_ra>
// kernel: tpu_custom_call.1
= control target key start
LH: loop header
LB: loop body
LE: loop exit
PB: predicated region body
PF: predicated region fallthrough
CT: control target
= control target key end

     0   :  { %9 = vsyncpa [#allocation4], 0  ;;  %s217_s0 = inlined_call_operand.<no memory space> [shape: f32[1], index: 0, kind: input, shape index: {}]   ;;  %s218_s1 = inlined_call_operand.hbm [shape: f32[2,8,128], index: 1, kind: input, shape index: {}]   ;;  %s219_s2 = inlined_call_operand.hbm [shape: f32[1,8,128], index: 2, kind: input, shape index: {}]   ;;  %s220_s3 = inlined_call_operand.hbm [shape: f32[2,8,128], index: 3, kind: output, shape index: {}]  }
   0x1   :  { %10 = vsyncpa [#allocation7], 0 }
   0x2   :  { %11 = vsyncpa [#allocation5], 0  ;;  %s147_s12 = smov [#allocation3]   ;;  %s75_s16 = scalar_lea.hbm %s218_s1, 256 }
   0x3   :  { %s19_s13 = sshll.u32 %s147_s12, 4  ;;  %p76_p0 = scmp.ne.s32.totalorder %s218_s1, %s75_s16  ;;  %s20_s13 = int_to_ptr.vmem [resolvable:$true] %s19_s13 }
   0x4   :  { %p79_p1 = scmp.lt.u32.totalorder %s75_s16, %s218_s1 }
   0x6   :  { %p81_p2 = pnand %p79_p1, %p76_p0 }
   0x8   :  { %84 = shalt.err (!%p81_p2)
}
   0x9   :  { %s85_s21 = scalar_lea.vmem %s20_s13, 256  ;;  %p90_p4 = scmp.lt.s32.totalorder %s20_s13, %s20_s13 }
   0xa   :  { %p86_p3 = scmp.ne.s32.totalorder %s20_s13, %s85_s21  ;;  %p91_p5 = scmp.lt.s32.totalorder %s85_s21, %s85_s21 }
   0xc   :  { %p92_p6 = por %p91_p5, %p90_p4 }
   0xe   :  { %p93_p7 = pnand %p92_p6, %p86_p3 }
  0x10   :  { %96 = shalt.err (!%p93_p7)
}
  0x11   :  { %s148_s22 = smov 128   ;;  %s149_s23 = smov 8  }
  0x12   :  { %25 = dma.hbm_to_vmem [thread:$0]  %s218_s1, 256, %s20_s13, [#allocation4], %s148_s22, %s148_s22, %s149_s23  }
  0x13   :  { %s150_s26 = smov [#allocation6]   ;;  %s97_s30 = scalar_lea.hbm %s219_s2, 128 }
  0x14   :  { %s32_s27 = sshll.u32 %s150_s26, 4  ;;  %p98_p8 = scmp.ne.s32.totalorder %s219_s2, %s97_s30  ;;  %s33_s27 = int_to_ptr.vmem [resolvable:$true] %s32_s27 }
  0x15   :  { %p101_p9 = scmp.lt.u32.totalorder %s97_s30, %s219_s2 }
  0x17   :  { %p103_p10 = pnand %p101_p9, %p98_p8 }
  0x19   :  { %106 = shalt.err (!%p103_p10)
}
  0x1a   :  { %s107_s8 = scalar_lea.vmem %s33_s27, 128  ;;  %p112_p12 = scmp.lt.s32.totalorder %s33_s27, %s33_s27 }
  0x1b   :  { %p108_p11 = scmp.ne.s32.totalorder %s33_s27, %s107_s8  ;;  %p113_p13 = scmp.lt.s32.totalorder %s107_s8, %s107_s8 }
  0x1d   :  { %p114_p0 = por %p113_p13, %p112_p12 }
  0x1f   :  { %p115_p1 = pnand %p114_p0, %p108_p11 }
  0x21   :  { %118 = shalt.err (!%p115_p1)
}
  0x22   :  { %35 = dma.hbm_to_vmem [thread:$0]  %s219_s2, 128, %s33_s27, [#allocation7]  }
  0x23   :  { %141 = dma.done.wait [#allocation4], 256  }
  0x24   :  { %142 = vsyncadd [#allocation4], 4294967040 }
  0x25   :  { %143 = dma.done.wait [#allocation7], 128  }
  0x26   :  { %144 = vsyncadd [#allocation7], 4294967168  ;;  %v46_v0 = vstv %s217_s0  ;;  %v43_v1 = vld [vmem:[#allocation3] sm:$0xff]  ;;  %v45_v2 = vld [vmem:[#allocation6] sm:$0xff]  ;;  %s151_s12 = smov [#allocation8]  }
  0x27   :  { %v44_v3 = vld [vmem:[#allocation3 + $0x8] sm:$0xff]  ;;  %s57_s13 = sshll.u32 %s151_s12, 4  ;;  %v47_v4 = vmul.f32 %v46_v0, %v45_v2  ;;  %s58_s13 = int_to_ptr.vmem [resolvable:$true] %s57_s13 }
  0x28   :  { %s119_s2 = scalar_lea.vmem %s58_s13, 256  ;;  %p124_p3 = scmp.lt.s32.totalorder %s58_s13, %s58_s13 }
  0x29   :  { %v48_v5 = vadd.f32 %v47_v4, %v43_v1  ;;  %v49_v6 = vadd.f32 %v47_v4, %v44_v3  ;;  %p120_p2 = scmp.ne.s32.totalorder %s58_s13, %s119_s2  ;;  %p125_p4 = scmp.lt.s32.totalorder %s119_s2, %s119_s2 }
  0x2b   :  { %50 = vst [vmem:[#allocation8] sm:$0xff] %v48_v5  ;;  %51 = vst [vmem:[#allocation8 + $0x8] sm:$0xff] %v49_v6  ;;  %p126_p5 = por %p125_p4, %p124_p3 }
  0x2d   :  { %p127_p6 = pnand %p126_p5, %p120_p2 }
  0x2f   :  { %130 = shalt.err (!%p127_p6)
}
  0x30   :  { %s131_s15 = scalar_lea.hbm %s220_s3, 256 }
  0x31   :  { %p132_p7 = scmp.ne.s32.totalorder %s220_s3, %s131_s15  ;;  %p135_p8 = scmp.lt.u32.totalorder %s131_s15, %s220_s3 }
  0x33   :  { %p137_p9 = pnand %p135_p8, %p132_p7 }
  0x35   :  { %140 = shalt.err (!%p137_p9)
}
  0x36   :  { %63 = dma.vmem_to_hbm [thread:$0]  %s58_s13, 256, %s220_s3, [#allocation5], %s148_s22, %s148_s22, %s149_s23  }
  0x37   :  { %145 = dma.done.wait [#allocation5], 256  }
  0x38   :  { %146 = vsyncadd [#allocation5], 4294967040 }
  0x39   :  { %67 = vsyncpa [#allocation4], 1 }
  0x3a   :  { %68 = vsyncpa [#allocation7], 1 }
  0x3b   :  { %69 = vsyncpa [#allocation5], 1 }

</bundles_post_ra>
